<compile_context>
chip_gen: v6e
topology: v6e:2x2x1
jax: 0.10.0
libtpu: 0.0.40
codegen_flags: <defaults>
</compile_context>

<pallas_src>
import numpy as np
import jax
import jax.numpy as jnp
from jax.experimental import pallas as pl
from jax.experimental.pallas import tpu as pltpu


# ------------------------------------------------------------------ helpers --
def _tap_masks(h, w):
    """(9, h*w) f32 masks: mask[t, n] = 1 iff the tap-t source pixel of output
    position n lies inside the image (emulates zero padding of pad=1)."""
    hh, ww = np.meshgrid(np.arange(h), np.arange(w), indexing="ij")
    hh, ww = hh.reshape(-1), ww.reshape(-1)
    m = np.zeros((9, h * w), np.float32)
    for t in range(9):
        dy, dx = t // 3 - 1, t % 3 - 1
        m[t] = ((hh + dy >= 0) & (hh + dy < h) & (ww + dx >= 0) & (ww + dx < w))
    return m


def _pack_w3x3(w):
    """(Cout, Cin, 3, 3) -> (Cout, 9*Cin) bf16, rows tap-major (ky*3+kx), then Cin."""
    co, ci = w.shape[0], w.shape[1]
    return jnp.transpose(w, (0, 2, 3, 1)).reshape(co, 9 * ci).astype(jnp.bfloat16)


def _bn_scale_shift(gamma, beta, mean, var, eps=1e-5):
    """Inference BatchNorm folded to y = x*scale + shift (per-channel)."""
    scale = gamma / jnp.sqrt(var + eps)
    shift = beta - mean * scale
    return (scale.reshape(-1, 1).astype(jnp.float32),
            shift.reshape(-1, 1).astype(jnp.float32))


# ------------------------------------------------------------------- kernel --
def _make_convblock_kernel(width, n_pix, has_downsample):
    def kernel(x_ref, mask_ref, s1_ref, t1_ref, w1_ref, s2_ref, t2_ref, w2_ref,
               s3_ref, t3_ref, w3_ref, *rest):
        if has_downsample:
            s4_ref, t4_ref, wd_ref, o_ref = rest
        else:
            (o_ref,) = rest

        x = x_ref[0]            # (Cin, N)  f32, N = H*W on lanes
        masks = mask_ref[...]   # (9, N)    f32

        def bn_relu(h, s_ref, t_ref):
            # inference-mode BN (scale/shift) + ReLU, f32 VPU work.
            return jnp.maximum(h * s_ref[...] + t_ref[...], 0.0)

        def conv3x3(h, w_ref):
            # im2col: 9 rolled+masked copies stacked on the contraction axis,
            # then ONE (Cout, 9*Cin) x (9*Cin, N) MXU matmul (bf16 in, f32 acc).
            taps = []
            for t in range(9):
                d = (t // 3 - 1) * width + (t % 3 - 1)   # flat source offset
                if d == 0:
                    taps.append(h)                       # center tap: identity
                else:
                    shifted = pltpu.roll(h, shift=(-d) % n_pix, axis=1)
                    taps.append(shifted * masks[t:t + 1, :])
            im2col = jnp.concatenate(taps, axis=0).astype(jnp.bfloat16)
            return jnp.dot(w_ref[...], im2col, preferred_element_type=jnp.float32)

        out1 = conv3x3(bn_relu(x, s1_ref, t1_ref), w1_ref)      # (C1, N)
        out2 = conv3x3(bn_relu(out1, s2_ref, t2_ref), w2_ref)   # (C2, N)
        out3 = conv3x3(bn_relu(out2, s3_ref, t3_ref), w3_ref)   # (C2, N)
        cat = jnp.concatenate([out1, out2, out3], axis=0)       # (Cout, N)

        if has_downsample:
            hd = bn_relu(x, s4_ref, t4_ref).astype(jnp.bfloat16)
            residual = jnp.dot(wd_ref[...], hd, preferred_element_type=jnp.float32)
        else:
            residual = x
        o_ref[0] = (cat + residual).astype(o_ref.dtype)

    return kernel


# ------------------------------------------------------------------ wrapper --
def convblock_forward(x, params):
    """x: (B, in_planes, H, W) f32 -> (B, out_planes, H, W) f32."""
    B, cin, H, W = x.shape
    c1, c2 = params["w1"].shape[0], params["w2"].shape[0]
    cout = c1 + 2 * c2
    has_ds = "wd" in params
    n = H * W

    x2 = x.reshape(B, cin, n).astype(jnp.float32)      # pure reshape, no transpose
    masks = jnp.asarray(_tap_masks(H, W))

    s1, t1 = _bn_scale_shift(*params["bn1"])
    s2, t2 = _bn_scale_shift(*params["bn2"])
    s3, t3 = _bn_scale_shift(*params["bn3"])
    w1p, w2p, w3p = map(_pack_w3x3, (params["w1"], params["w2"], params["w3"]))

    def const(shape):                                  # constant-index spec: no re-DMA
        return pl.BlockSpec(shape, lambda b: (0,) * len(shape))

    operands = [x2, masks, s1, t1, w1p, s2, t2, w2p, s3, t3, w3p]
    in_specs = [
        pl.BlockSpec((1, cin, n), lambda b: (b, 0, 0)),
        const((9, n)),
        const((cin, 1)), const((cin, 1)), const((c1, 9 * cin)),
        const((c1, 1)), const((c1, 1)), const((c2, 9 * c1)),
        const((c2, 1)), const((c2, 1)), const((c2, 9 * c2)),
    ]
    if has_ds:
        s4, t4 = _bn_scale_shift(*params["bn4"])
        wdp = params["wd"].reshape(cout, cin).astype(jnp.bfloat16)
        operands += [s4, t4, wdp]
        in_specs += [const((cin, 1)), const((cin, 1)), const((cout, cin))]

    out = pl.pallas_call(
        _make_convblock_kernel(W, n, has_ds),
        out_shape=jax.ShapeDtypeStruct((B, cout, n), jnp.float32),
        grid=(B,),
        in_specs=in_specs,
        out_specs=pl.BlockSpec((1, cout, n), lambda b: (b, 0, 0)),
        compiler_params=pltpu.CompilerParams(dimension_semantics=("parallel",)),
    )(*operands)
    return out.reshape(B, cout, H, W)


# ----------------------------------------------------------- init & reference --
def init_convblock_params(key, in_planes, out_planes):
    c1, c2 = out_planes // 2, out_planes // 4

    def conv_w(k, co, ci, ksz):                 # PyTorch Conv2d default init bound
        bound = 1.0 / np.sqrt(ci * ksz * ksz)
        return jax.random.uniform(k, (co, ci, ksz, ksz), jnp.float32, -bound, bound)

    def bn(k, c):                               # randomized inference-mode BN stats
        k1, k2, k3, k4 = jax.random.split(k, 4)
        return (jax.random.uniform(k1, (c,), jnp.float32, 0.5, 1.5),   # gamma
                0.1 * jax.random.normal(k2, (c,), jnp.float32),        # beta
                0.1 * jax.random.normal(k3, (c,), jnp.float32),        # running_mean
                jax.random.uniform(k4, (c,), jnp.float32, 0.5, 1.5))   # running_var

    keys = jax.random.split(key, 8)
    p = {"bn1": bn(keys[0], in_planes), "w1": conv_w(keys[1], c1, in_planes, 3),
         "bn2": bn(keys[2], c1),        "w2": conv_w(keys[3], c2, c1, 3),
         "bn3": bn(keys[4], c2),        "w3": conv_w(keys[5], c2, c2, 3)}
    if in_planes != out_planes:
        p["bn4"] = bn(keys[6], in_planes)
        p["wd"] = conv_w(keys[7], out_planes, in_planes, 1)
    return p


def _bn_ref(x, gamma, beta, mean, var, eps=1e-5):
    inv = gamma / jnp.sqrt(var + eps)
    return (x - mean[None, :, None, None]) * inv[None, :, None, None] \
        + beta[None, :, None, None]


def _conv_ref(x, w, pad):
    return jax.lax.conv_general_dilated(
        x, w, window_strides=(1, 1), padding=((pad, pad), (pad, pad)),
        dimension_numbers=("NCHW", "OIHW", "NCHW"))


def convblock_reference(x, params):
    out1 = _conv_ref(jax.nn.relu(_bn_ref(x, *params["bn1"])), params["w1"], 1)
    out2 = _conv_ref(jax.nn.relu(_bn_ref(out1, *params["bn2"])), params["w2"], 1)
    out3 = _conv_ref(jax.nn.relu(_bn_ref(out2, *params["bn3"])), params["w3"], 1)
    cat = jnp.concatenate([out1, out2, out3], axis=1)
    if "wd" in params:
        residual = _conv_ref(jax.nn.relu(_bn_ref(x, *params["bn4"])), params["wd"], 0)
    else:
        residual = x
    return cat + residual


# --------------------------------------------------------------------- main --
if __name__ == "__main__":
    B, in_planes, out_planes, H, W = 2, 16, 32, 16, 16   # exercises downsample path

    key = jax.random.PRNGKey(0)
    key, kx = jax.random.split(key)
    x = jax.random.normal(kx, (B, in_planes, H, W), jnp.float32)
    params = init_convblock_params(key, in_planes, out_planes)

    out = jax.jit(convblock_forward)(x, params)
    out = jax.block_until_ready(out)
    assert out.shape == (B, out_planes, H, W), out.shape
    assert out.dtype == jnp.float32

    # Sanity check against a plain-JAX reference (tolerance covers bf16 MXU operands).
    ref = convblock_reference(x, params)
    np.testing.assert_allclose(np.asarray(out), np.asarray(ref), atol=5e-2, rtol=5e-2)
    print("KERNEL_OK")
</pallas_src>

<mosaic_0001>
module attributes {stable_mosaic.version = 11 : i64} {
  func.func @kernel(%arg0: i32, %arg1: memref<1x16x256xf32, #tpu.memory_space<vmem>>, %arg2: memref<9x256xf32, #tpu.memory_space<vmem>>, %arg3: memref<16x1xf32, #tpu.memory_space<vmem>>, %arg4: memref<16x1xf32, #tpu.memory_space<vmem>>, %arg5: memref<16x144xbf16, #tpu.memory_space<vmem>>, %arg6: memref<16x1xf32, #tpu.memory_space<vmem>>, %arg7: memref<16x1xf32, #tpu.memory_space<vmem>>, %arg8: memref<8x144xbf16, #tpu.memory_space<vmem>>, %arg9: memref<8x1xf32, #tpu.memory_space<vmem>>, %arg10: memref<8x1xf32, #tpu.memory_space<vmem>>, %arg11: memref<8x72xbf16, #tpu.memory_space<vmem>>, %arg12: memref<16x1xf32, #tpu.memory_space<vmem>>, %arg13: memref<16x1xf32, #tpu.memory_space<vmem>>, %arg14: memref<32x16xbf16, #tpu.memory_space<vmem>>, %arg15: memref<1x32x256xf32, #tpu.memory_space<vmem>>) attributes {dimension_semantics = [#tpu.dimension_semantics<parallel>], iteration_bounds = array<i64: 2>, scalar_prefetch = 0 : i64, scratch_operands = 0 : i64, tpu.core_type = #tpu.core_type<tc>, window_params = [{transform_indices = @transform_0, window_bounds = array<i64: 1, 16, 256>}, {pipeline_mode = #tpu.pipeline_mode<synchronous>, transform_indices = @transform_1, window_bounds = array<i64: 9, 256>}, {pipeline_mode = #tpu.pipeline_mode<synchronous>, transform_indices = @transform_2, window_bounds = array<i64: 16, 1>}, {pipeline_mode = #tpu.pipeline_mode<synchronous>, transform_indices = @transform_3, window_bounds = array<i64: 16, 1>}, {pipeline_mode = #tpu.pipeline_mode<synchronous>, transform_indices = @transform_4, window_bounds = array<i64: 16, 144>}, {pipeline_mode = #tpu.pipeline_mode<synchronous>, transform_indices = @transform_5, window_bounds = array<i64: 16, 1>}, {pipeline_mode = #tpu.pipeline_mode<synchronous>, transform_indices = @transform_6, window_bounds = array<i64: 16, 1>}, {pipeline_mode = #tpu.pipeline_mode<synchronous>, transform_indices = @transform_7, window_bounds = array<i64: 8, 144>}, {pipeline_mode = #tpu.pipeline_mode<synchronous>, transform_indices = @transform_8, window_bounds = array<i64: 8, 1>}, {pipeline_mode = #tpu.pipeline_mode<synchronous>, transform_indices = @transform_9, window_bounds = array<i64: 8, 1>}, {pipeline_mode = #tpu.pipeline_mode<synchronous>, transform_indices = @transform_10, window_bounds = array<i64: 8, 72>}, {pipeline_mode = #tpu.pipeline_mode<synchronous>, transform_indices = @transform_11, window_bounds = array<i64: 16, 1>}, {pipeline_mode = #tpu.pipeline_mode<synchronous>, transform_indices = @transform_12, window_bounds = array<i64: 16, 1>}, {pipeline_mode = #tpu.pipeline_mode<synchronous>, transform_indices = @transform_13, window_bounds = array<i64: 32, 16>}, {transform_indices = @transform_14, window_bounds = array<i64: 1, 32, 256>}]} {
    %c0 = arith.constant 0 : index
    %c0_0 = arith.constant 0 : index
    %c0_1 = arith.constant 0 : index
    %0 = vector.load %arg1[%c0, %c0_0, %c0_1] : memref<1x16x256xf32, #tpu.memory_space<vmem>>, vector<1x16x256xf32>
    %1 = vector.shape_cast %0 : vector<1x16x256xf32> to vector<16x256xf32>
    %c0_2 = arith.constant 0 : index
    %c0_3 = arith.constant 0 : index
    %2 = vector.load %arg2[%c0_2, %c0_3] : memref<9x256xf32, #tpu.memory_space<vmem>>, vector<9x256xf32>
    %c0_4 = arith.constant 0 : index
    %c0_5 = arith.constant 0 : index
    %3 = vector.load %arg3[%c0_4, %c0_5] : memref<16x1xf32, #tpu.memory_space<vmem>>, vector<16x1xf32>
    %4 = vector.broadcast %3 : vector<16x1xf32> to vector<16x256xf32>
    %5 = arith.mulf %1, %4 : vector<16x256xf32>
    %c0_6 = arith.constant 0 : index
    %c0_7 = arith.constant 0 : index
    %6 = vector.load %arg4[%c0_6, %c0_7] : memref<16x1xf32, #tpu.memory_space<vmem>>, vector<16x1xf32>
    %7 = vector.broadcast %6 : vector<16x1xf32> to vector<16x256xf32>
    %8 = arith.addf %5, %7 : vector<16x256xf32>
    %cst = arith.constant 0.000000e+00 : f32
    %9 = vector.broadcast %cst : f32 to vector<16x256xf32>
    %10 = arith.maximumf %8, %9 : vector<16x256xf32>
    %c17_i32 = arith.constant 17 : i32
    %11 = tpu.dynamic_rotate %10 by %c17_i32 dim 1 : vector<16x256xf32>, i32 -> vector<16x256xf32>
    %12 = vector.extract_strided_slice %2 {offsets = [0, 0], sizes = [1, 256], strides = [1, 1]} : vector<9x256xf32> to vector<1x256xf32>
    %13 = vector.broadcast %12 : vector<1x256xf32> to vector<16x256xf32>
    %14 = arith.mulf %11, %13 : vector<16x256xf32>
    %c16_i32 = arith.constant 16 : i32
    %15 = tpu.dynamic_rotate %10 by %c16_i32 dim 1 : vector<16x256xf32>, i32 -> vector<16x256xf32>
    %16 = vector.extract_strided_slice %2 {offsets = [1, 0], sizes = [1, 256], strides = [1, 1]} : vector<9x256xf32> to vector<1x256xf32>
    %17 = vector.broadcast %16 : vector<1x256xf32> to vector<16x256xf32>
    %18 = arith.mulf %15, %17 : vector<16x256xf32>
    %c15_i32 = arith.constant 15 : i32
    %19 = tpu.dynamic_rotate %10 by %c15_i32 dim 1 : vector<16x256xf32>, i32 -> vector<16x256xf32>
    %20 = vector.extract_strided_slice %2 {offsets = [2, 0], sizes = [1, 256], strides = [1, 1]} : vector<9x256xf32> to vector<1x256xf32>
    %21 = vector.broadcast %20 : vector<1x256xf32> to vector<16x256xf32>
    %22 = arith.mulf %19, %21 : vector<16x256xf32>
    %c1_i32 = arith.constant 1 : i32
    %23 = tpu.dynamic_rotate %10 by %c1_i32 dim 1 : vector<16x256xf32>, i32 -> vector<16x256xf32>
    %24 = vector.extract_strided_slice %2 {offsets = [3, 0], sizes = [1, 256], strides = [1, 1]} : vector<9x256xf32> to vector<1x256xf32>
    %25 = vector.broadcast %24 : vector<1x256xf32> to vector<16x256xf32>
    %26 = arith.mulf %23, %25 : vector<16x256xf32>
    %c255_i32 = arith.constant 255 : i32
    %27 = tpu.dynamic_rotate %10 by %c255_i32 dim 1 : vector<16x256xf32>, i32 -> vector<16x256xf32>
    %28 = vector.extract_strided_slice %2 {offsets = [5, 0], sizes = [1, 256], strides = [1, 1]} : vector<9x256xf32> to vector<1x256xf32>
    %29 = vector.broadcast %28 : vector<1x256xf32> to vector<16x256xf32>
    %30 = arith.mulf %27, %29 : vector<16x256xf32>
    %c241_i32 = arith.constant 241 : i32
    %31 = tpu.dynamic_rotate %10 by %c241_i32 dim 1 : vector<16x256xf32>, i32 -> vector<16x256xf32>
    %32 = vector.extract_strided_slice %2 {offsets = [6, 0], sizes = [1, 256], strides = [1, 1]} : vector<9x256xf32> to vector<1x256xf32>
    %33 = vector.broadcast %32 : vector<1x256xf32> to vector<16x256xf32>
    %34 = arith.mulf %31, %33 : vector<16x256xf32>
    %c240_i32 = arith.constant 240 : i32
    %35 = tpu.dynamic_rotate %10 by %c240_i32 dim 1 : vector<16x256xf32>, i32 -> vector<16x256xf32>
    %36 = vector.extract_strided_slice %2 {offsets = [7, 0], sizes = [1, 256], strides = [1, 1]} : vector<9x256xf32> to vector<1x256xf32>
    %37 = vector.broadcast %36 : vector<1x256xf32> to vector<16x256xf32>
    %38 = arith.mulf %35, %37 : vector<16x256xf32>
    %c239_i32 = arith.constant 239 : i32
    %39 = tpu.dynamic_rotate %10 by %c239_i32 dim 1 : vector<16x256xf32>, i32 -> vector<16x256xf32>
    %40 = vector.extract_strided_slice %2 {offsets = [8, 0], sizes = [1, 256], strides = [1, 1]} : vector<9x256xf32> to vector<1x256xf32>
    %41 = vector.broadcast %40 : vector<1x256xf32> to vector<16x256xf32>
    %42 = arith.mulf %39, %41 : vector<16x256xf32>
    %43 = tpu.concatenate %14, %18, %22, %26, %10, %30, %34, %38, %42 in 0 : vector<16x256xf32>, vector<16x256xf32>, vector<16x256xf32>, vector<16x256xf32>, vector<16x256xf32>, vector<16x256xf32>, vector<16x256xf32>, vector<16x256xf32>, vector<16x256xf32> -> vector<144x256xf32>
    %44 = arith.truncf %43 : vector<144x256xf32> to vector<144x256xbf16>
    %c0_8 = arith.constant 0 : index
    %c0_9 = arith.constant 0 : index
    %45 = vector.load %arg5[%c0_8, %c0_9] : memref<16x144xbf16, #tpu.memory_space<vmem>>, vector<16x144xbf16>
    %cst_10 = arith.constant dense<0.000000e+00> : vector<16x256xf32>
    %46 = tpu.matmul %45, %44, %cst_10 {dimension_numbers = #tpu.dot_dimension_numbers<[1], [0], [0], [1], [0, 0, 1, 1], [], []>} : vector<16x144xbf16>, vector<144x256xbf16>, vector<16x256xf32> -> vector<16x256xf32>
    %c0_11 = arith.constant 0 : index
    %c0_12 = arith.constant 0 : index
    %47 = vector.load %arg6[%c0_11, %c0_12] : memref<16x1xf32, #tpu.memory_space<vmem>>, vector<16x1xf32>
    %48 = vector.broadcast %47 : vector<16x1xf32> to vector<16x256xf32>
    %49 = arith.mulf %46, %48 : vector<16x256xf32>
    %c0_13 = arith.constant 0 : index
    %c0_14 = arith.constant 0 : index
    %50 = vector.load %arg7[%c0_13, %c0_14] : memref<16x1xf32, #tpu.memory_space<vmem>>, vector<16x1xf32>
    %51 = vector.broadcast %50 : vector<16x1xf32> to vector<16x256xf32>
    %52 = arith.addf %49, %51 : vector<16x256xf32>
    %cst_15 = arith.constant 0.000000e+00 : f32
    %53 = vector.broadcast %cst_15 : f32 to vector<16x256xf32>
    %54 = arith.maximumf %52, %53 : vector<16x256xf32>
    %c17_i32_16 = arith.constant 17 : i32
    %55 = tpu.dynamic_rotate %54 by %c17_i32_16 dim 1 : vector<16x256xf32>, i32 -> vector<16x256xf32>
    %56 = vector.extract_strided_slice %2 {offsets = [0, 0], sizes = [1, 256], strides = [1, 1]} : vector<9x256xf32> to vector<1x256xf32>
    %57 = vector.broadcast %56 : vector<1x256xf32> to vector<16x256xf32>
    %58 = arith.mulf %55, %57 : vector<16x256xf32>
    %c16_i32_17 = arith.constant 16 : i32
    %59 = tpu.dynamic_rotate %54 by %c16_i32_17 dim 1 : vector<16x256xf32>, i32 -> vector<16x256xf32>
    %60 = vector.extract_strided_slice %2 {offsets = [1, 0], sizes = [1, 256], strides = [1, 1]} : vector<9x256xf32> to vector<1x256xf32>
    %61 = vector.broadcast %60 : vector<1x256xf32> to vector<16x256xf32>
    %62 = arith.mulf %59, %61 : vector<16x256xf32>
    %c15_i32_18 = arith.constant 15 : i32
    %63 = tpu.dynamic_rotate %54 by %c15_i32_18 dim 1 : vector<16x256xf32>, i32 -> vector<16x256xf32>
    %64 = vector.extract_strided_slice %2 {offsets = [2, 0], sizes = [1, 256], strides = [1, 1]} : vector<9x256xf32> to vector<1x256xf32>
    %65 = vector.broadcast %64 : vector<1x256xf32> to vector<16x256xf32>
    %66 = arith.mulf %63, %65 : vector<16x256xf32>
    %c1_i32_19 = arith.constant 1 : i32
    %67 = tpu.dynamic_rotate %54 by %c1_i32_19 dim 1 : vector<16x256xf32>, i32 -> vector<16x256xf32>
    %68 = vector.extract_strided_slice %2 {offsets = [3, 0], sizes = [1, 256], strides = [1, 1]} : vector<9x256xf32> to vector<1x256xf32>
    %69 = vector.broadcast %68 : vector<1x256xf32> to vector<16x256xf32>
    %70 = arith.mulf %67, %69 : vector<16x256xf32>
    %c255_i32_20 = arith.constant 255 : i32
    %71 = tpu.dynamic_rotate %54 by %c255_i32_20 dim 1 : vector<16x256xf32>, i32 -> vector<16x256xf32>
    %72 = vector.extract_strided_slice %2 {offsets = [5, 0], sizes = [1, 256], strides = [1, 1]} : vector<9x256xf32> to vector<1x256xf32>
    %73 = vector.broadcast %72 : vector<1x256xf32> to vector<16x256xf32>
    %74 = arith.mulf %71, %73 : vector<16x256xf32>
    %c241_i32_21 = arith.constant 241 : i32
    %75 = tpu.dynamic_rotate %54 by %c241_i32_21 dim 1 : vector<16x256xf32>, i32 -> vector<16x256xf32>
    %76 = vector.extract_strided_slice %2 {offsets = [6, 0], sizes = [1, 256], strides = [1, 1]} : vector<9x256xf32> to vector<1x256xf32>
    %77 = vector.broadcast %76 : vector<1x256xf32> to vector<16x256xf32>
    %78 = arith.mulf %75, %77 : vector<16x256xf32>
    %c240_i32_22 = arith.constant 240 : i32
    %79 = tpu.dynamic_rotate %54 by %c240_i32_22 dim 1 : vector<16x256xf32>, i32 -> vector<16x256xf32>
    %80 = vector.extract_strided_slice %2 {offsets = [7, 0], sizes = [1, 256], strides = [1, 1]} : vector<9x256xf32> to vector<1x256xf32>
    %81 = vector.broadcast %80 : vector<1x256xf32> to vector<16x256xf32>
    %82 = arith.mulf %79, %81 : vector<16x256xf32>
    %c239_i32_23 = arith.constant 239 : i32
    %83 = tpu.dynamic_rotate %54 by %c239_i32_23 dim 1 : vector<16x256xf32>, i32 -> vector<16x256xf32>
    %84 = vector.extract_strided_slice %2 {offsets = [8, 0], sizes = [1, 256], strides = [1, 1]} : vector<9x256xf32> to vector<1x256xf32>
    %85 = vector.broadcast %84 : vector<1x256xf32> to vector<16x256xf32>
    %86 = arith.mulf %83, %85 : vector<16x256xf32>
    %87 = tpu.concatenate %58, %62, %66, %70, %54, %74, %78, %82, %86 in 0 : vector<16x256xf32>, vector<16x256xf32>, vector<16x256xf32>, vector<16x256xf32>, vector<16x256xf32>, vector<16x256xf32>, vector<16x256xf32>, vector<16x256xf32>, vector<16x256xf32> -> vector<144x256xf32>
    %88 = arith.truncf %87 : vector<144x256xf32> to vector<144x256xbf16>
    %c0_24 = arith.constant 0 : index
    %c0_25 = arith.constant 0 : index
    %89 = vector.load %arg8[%c0_24, %c0_25] : memref<8x144xbf16, #tpu.memory_space<vmem>>, vector<8x144xbf16>
    %cst_26 = arith.constant dense<0.000000e+00> : vector<8x256xf32>
    %90 = tpu.matmul %89, %88, %cst_26 {dimension_numbers = #tpu.dot_dimension_numbers<[1], [0], [0], [1], [0, 0, 1, 1], [], []>} : vector<8x144xbf16>, vector<144x256xbf16>, vector<8x256xf32> -> vector<8x256xf32>
    %c0_27 = arith.constant 0 : index
    %c0_28 = arith.constant 0 : index
    %91 = vector.load %arg9[%c0_27, %c0_28] : memref<8x1xf32, #tpu.memory_space<vmem>>, vector<8x1xf32>
    %92 = vector.broadcast %91 : vector<8x1xf32> to vector<8x256xf32>
    %93 = arith.mulf %90, %92 : vector<8x256xf32>
    %c0_29 = arith.constant 0 : index
    %c0_30 = arith.constant 0 : index
    %94 = vector.load %arg10[%c0_29, %c0_30] : memref<8x1xf32, #tpu.memory_space<vmem>>, vector<8x1xf32>
    %95 = vector.broadcast %94 : vector<8x1xf32> to vector<8x256xf32>
    %96 = arith.addf %93, %95 : vector<8x256xf32>
    %cst_31 = arith.constant 0.000000e+00 : f32
    %97 = vector.broadcast %cst_31 : f32 to vector<8x256xf32>
    %98 = arith.maximumf %96, %97 : vector<8x256xf32>
    %c17_i32_32 = arith.constant 17 : i32
    %99 = tpu.dynamic_rotate %98 by %c17_i32_32 dim 1 : vector<8x256xf32>, i32 -> vector<8x256xf32>
    %100 = vector.extract_strided_slice %2 {offsets = [0, 0], sizes = [1, 256], strides = [1, 1]} : vector<9x256xf32> to vector<1x256xf32>
    %101 = vector.broadcast %100 : vector<1x256xf32> to vector<8x256xf32>
    %102 = arith.mulf %99, %101 : vector<8x256xf32>
    %c16_i32_33 = arith.constant 16 : i32
    %103 = tpu.dynamic_rotate %98 by %c16_i32_33 dim 1 : vector<8x256xf32>, i32 -> vector<8x256xf32>
    %104 = vector.extract_strided_slice %2 {offsets = [1, 0], sizes = [1, 256], strides = [1, 1]} : vector<9x256xf32> to vector<1x256xf32>
    %105 = vector.broadcast %104 : vector<1x256xf32> to vector<8x256xf32>
    %106 = arith.mulf %103, %105 : vector<8x256xf32>
    %c15_i32_34 = arith.constant 15 : i32
    %107 = tpu.dynamic_rotate %98 by %c15_i32_34 dim 1 : vector<8x256xf32>, i32 -> vector<8x256xf32>
    %108 = vector.extract_strided_slice %2 {offsets = [2, 0], sizes = [1, 256], strides = [1, 1]} : vector<9x256xf32> to vector<1x256xf32>
    %109 = vector.broadcast %108 : vector<1x256xf32> to vector<8x256xf32>
    %110 = arith.mulf %107, %109 : vector<8x256xf32>
    %c1_i32_35 = arith.constant 1 : i32
    %111 = tpu.dynamic_rotate %98 by %c1_i32_35 dim 1 : vector<8x256xf32>, i32 -> vector<8x256xf32>
    %112 = vector.extract_strided_slice %2 {offsets = [3, 0], sizes = [1, 256], strides = [1, 1]} : vector<9x256xf32> to vector<1x256xf32>
    %113 = vector.broadcast %112 : vector<1x256xf32> to vector<8x256xf32>
    %114 = arith.mulf %111, %113 : vector<8x256xf32>
    %c255_i32_36 = arith.constant 255 : i32
    %115 = tpu.dynamic_rotate %98 by %c255_i32_36 dim 1 : vector<8x256xf32>, i32 -> vector<8x256xf32>
    %116 = vector.extract_strided_slice %2 {offsets = [5, 0], sizes = [1, 256], strides = [1, 1]} : vector<9x256xf32> to vector<1x256xf32>
    %117 = vector.broadcast %116 : vector<1x256xf32> to vector<8x256xf32>
    %118 = arith.mulf %115, %117 : vector<8x256xf32>
    %c241_i32_37 = arith.constant 241 : i32
    %119 = tpu.dynamic_rotate %98 by %c241_i32_37 dim 1 : vector<8x256xf32>, i32 -> vector<8x256xf32>
    %120 = vector.extract_strided_slice %2 {offsets = [6, 0], sizes = [1, 256], strides = [1, 1]} : vector<9x256xf32> to vector<1x256xf32>
    %121 = vector.broadcast %120 : vector<1x256xf32> to vector<8x256xf32>
    %122 = arith.mulf %119, %121 : vector<8x256xf32>
    %c240_i32_38 = arith.constant 240 : i32
    %123 = tpu.dynamic_rotate %98 by %c240_i32_38 dim 1 : vector<8x256xf32>, i32 -> vector<8x256xf32>
    %124 = vector.extract_strided_slice %2 {offsets = [7, 0], sizes = [1, 256], strides = [1, 1]} : vector<9x256xf32> to vector<1x256xf32>
    %125 = vector.broadcast %124 : vector<1x256xf32> to vector<8x256xf32>
    %126 = arith.mulf %123, %125 : vector<8x256xf32>
    %c239_i32_39 = arith.constant 239 : i32
    %127 = tpu.dynamic_rotate %98 by %c239_i32_39 dim 1 : vector<8x256xf32>, i32 -> vector<8x256xf32>
    %128 = vector.extract_strided_slice %2 {offsets = [8, 0], sizes = [1, 256], strides = [1, 1]} : vector<9x256xf32> to vector<1x256xf32>
    %129 = vector.broadcast %128 : vector<1x256xf32> to vector<8x256xf32>
    %130 = arith.mulf %127, %129 : vector<8x256xf32>
    %131 = tpu.concatenate %102, %106, %110, %114, %98, %118, %122, %126, %130 in 0 : vector<8x256xf32>, vector<8x256xf32>, vector<8x256xf32>, vector<8x256xf32>, vector<8x256xf32>, vector<8x256xf32>, vector<8x256xf32>, vector<8x256xf32>, vector<8x256xf32> -> vector<72x256xf32>
    %132 = arith.truncf %131 : vector<72x256xf32> to vector<72x256xbf16>
    %c0_40 = arith.constant 0 : index
    %c0_41 = arith.constant 0 : index
    %133 = vector.load %arg11[%c0_40, %c0_41] : memref<8x72xbf16, #tpu.memory_space<vmem>>, vector<8x72xbf16>
    %cst_42 = arith.constant dense<0.000000e+00> : vector<8x256xf32>
    %134 = tpu.matmul %133, %132, %cst_42 {dimension_numbers = #tpu.dot_dimension_numbers<[1], [0], [0], [1], [0, 0, 1, 1], [], []>} : vector<8x72xbf16>, vector<72x256xbf16>, vector<8x256xf32> -> vector<8x256xf32>
    %135 = tpu.concatenate %46, %90, %134 in 0 : vector<16x256xf32>, vector<8x256xf32>, vector<8x256xf32> -> vector<32x256xf32>
    %c0_43 = arith.constant 0 : index
    %c0_44 = arith.constant 0 : index
    %136 = vector.load %arg12[%c0_43, %c0_44] : memref<16x1xf32, #tpu.memory_space<vmem>>, vector<16x1xf32>
    %137 = vector.broadcast %136 : vector<16x1xf32> to vector<16x256xf32>
    %138 = arith.mulf %1, %137 : vector<16x256xf32>
    %c0_45 = arith.constant 0 : index
    %c0_46 = arith.constant 0 : index
    %139 = vector.load %arg13[%c0_45, %c0_46] : memref<16x1xf32, #tpu.memory_space<vmem>>, vector<16x1xf32>
    %140 = vector.broadcast %139 : vector<16x1xf32> to vector<16x256xf32>
    %141 = arith.addf %138, %140 : vector<16x256xf32>
    %cst_47 = arith.constant 0.000000e+00 : f32
    %142 = vector.broadcast %cst_47 : f32 to vector<16x256xf32>
    %143 = arith.maximumf %141, %142 : vector<16x256xf32>
    %144 = arith.truncf %143 : vector<16x256xf32> to vector<16x256xbf16>
    %c0_48 = arith.constant 0 : index
    %c0_49 = arith.constant 0 : index
    %145 = vector.load %arg14[%c0_48, %c0_49] : memref<32x16xbf16, #tpu.memory_space<vmem>>, vector<32x16xbf16>
    %cst_50 = arith.constant dense<0.000000e+00> : vector<32x256xf32>
    %146 = tpu.matmul %145, %144, %cst_50 {dimension_numbers = #tpu.dot_dimension_numbers<[1], [0], [0], [1], [0, 0, 1, 1], [], []>} : vector<32x16xbf16>, vector<16x256xbf16>, vector<32x256xf32> -> vector<32x256xf32>
    %147 = arith.addf %135, %146 : vector<32x256xf32>
    %c0_51 = arith.constant 0 : index
    %c0_52 = arith.constant 0 : index
    %c0_53 = arith.constant 0 : index
    %148 = vector.load %arg15[%c0_51, %c0_52, %c0_53] : memref<1x32x256xf32, #tpu.memory_space<vmem>>, vector<1x32x256xf32>
    %149 = vector.shape_cast %148 : vector<1x32x256xf32> to vector<32x256xf32>
    %150 = vector.shape_cast %147 : vector<32x256xf32> to vector<1x32x256xf32>
    tpu.vector_store %arg15[%c0_51, %c0_52, %c0_53], %150 {strides = array<i32>} : memref<1x32x256xf32, #tpu.memory_space<vmem>>, vector<1x32x256xf32>,
    return
  }
  func.func @transform_0(%arg0: i32) -> (i32, i32, i32) {
    %c0_i32 = arith.constant 0 : i32
    %c0_i32_0 = arith.constant 0 : i32
    %c0_i32_1 = arith.constant 0 : i32
    return %arg0, %c0_i32, %c0_i32_0 : i32, i32, i32
  }
  func.func @transform_1(%arg0: i32) -> (i32, i32) {
    %c0_i32 = arith.constant 0 : i32
    %c0_i32_0 = arith.constant 0 : i32
    %c0_i32_1 = arith.constant 0 : i32
    return %c0_i32, %c0_i32_0 : i32, i32
  }
  func.func @transform_2(%arg0: i32) -> (i32, i32) {
    %c0_i32 = arith.constant 0 : i32
    %c0_i32_0 = arith.constant 0 : i32
    %c0_i32_1 = arith.constant 0 : i32
    return %c0_i32, %c0_i32_0 : i32, i32
  }
  func.func @transform_3(%arg0: i32) -> (i32, i32) {
    %c0_i32 = arith.constant 0 : i32
    %c0_i32_0 = arith.constant 0 : i32
    %c0_i32_1 = arith.constant 0 : i32
    return %c0_i32, %c0_i32_0 : i32, i32
  }
  func.func @transform_4(%arg0: i32) -> (i32, i32) {
    %c0_i32 = arith.constant 0 : i32
    %c0_i32_0 = arith.constant 0 : i32
    %c0_i32_1 = arith.constant 0 : i32
    return %c0_i32, %c0_i32_0 : i32, i32
  }
  func.func @transform_5(%arg0: i32) -> (i32, i32) {
    %c0_i32 = arith.constant 0 : i32
    %c0_i32_0 = arith.constant 0 : i32
    %c0_i32_1 = arith.constant 0 : i32
    return %c0_i32, %c0_i32_0 : i32, i32
  }
  func.func @transform_6(%arg0: i32) -> (i32, i32) {
    %c0_i32 = arith.constant 0 : i32
    %c0_i32_0 = arith.constant 0 : i32
    %c0_i32_1 = arith.constant 0 : i32
    return %c0_i32, %c0_i32_0 : i32, i32
  }
  func.func @transform_7(%arg0: i32) -> (i32, i32) {
    %c0_i32 = arith.constant 0 : i32
    %c0_i32_0 = arith.constant 0 : i32
    %c0_i32_1 = arith.constant 0 : i32
    return %c0_i32, %c0_i32_0 : i32, i32
  }
  func.func @transform_8(%arg0: i32) -> (i32, i32) {
    %c0_i32 = arith.constant 0 : i32
    %c0_i32_0 = arith.constant 0 : i32
    %c0_i32_1 = arith.constant 0 : i32
    return %c0_i32, %c0_i32_0 : i32, i32
  }
  func.func @transform_9(%arg0: i32) -> (i32, i32) {
    %c0_i32 = arith.constant 0 : i32
    %c0_i32_0 = arith.constant 0 : i32
    %c0_i32_1 = arith.constant 0 : i32
    return %c0_i32, %c0_i32_0 : i32, i32
  }
  func.func @transform_10(%arg0: i32) -> (i32, i32) {
    %c0_i32 = arith.constant 0 : i32
    %c0_i32_0 = arith.constant 0 : i32
    %c0_i32_1 = arith.constant 0 : i32
    return %c0_i32, %c0_i32_0 : i32, i32
  }
  func.func @transform_11(%arg0: i32) -> (i32, i32) {
    %c0_i32 = arith.constant 0 : i32
    %c0_i32_0 = arith.constant 0 : i32
    %c0_i32_1 = arith.constant 0 : i32
    return %c0_i32, %c0_i32_0 : i32, i32
  }
  func.func @transform_12(%arg0: i32) -> (i32, i32) {
    %c0_i32 = arith.constant 0 : i32
    %c0_i32_0 = arith.constant 0 : i32
    %c0_i32_1 = arith.constant 0 : i32
    return %c0_i32, %c0_i32_0 : i32, i32
  }
  func.func @transform_13(%arg0: i32) -> (i32, i32) {
    %c0_i32 = arith.constant 0 : i32
    %c0_i32_0 = arith.constant 0 : i32
    %c0_i32_1 = arith.constant 0 : i32
    return %c0_i32, %c0_i32_0 : i32, i32
  }
  func.func @transform_14(%arg0: i32) -> (i32, i32, i32) {
    %c0_i32 = arith.constant 0 : i32
    %c0_i32_0 = arith.constant 0 : i32
    %c0_i32_1 = arith.constant 0 : i32
    return %arg0, %c0_i32, %c0_i32_0 : i32, i32, i32
  }
}

</mosaic_0001>

<bundles_post_ra>
// kernel: convblock_forward.1
= control target key start
LH: loop header
LB: loop body
LE: loop exit
PB: predicated region body
PF: predicated region fallthrough
CT: control target
= control target key end

     0   :  { %s1496_s29 = smov 0   ;;  %s2189_s0 = inlined_call_operand.vmem [shape: f32[2,16,256], index: 0, kind: input, shape index: {}]   ;;  %s2190_s1 = inlined_call_operand.vmem [shape: f32[9,256], index: 1, kind: input, shape index: {}]   ;;  %s2191_s2 = inlined_call_operand.vmem [shape: f32[16,1], index: 2, kind: input, shape index: {}]   ;;  %s2192_s3 = inlined_call_operand.vmem [shape: f32[16,1], index: 3, kind: input, shape index: {}]   ;;  %s2193_s4 = inlined_call_operand.vmem [shape: bf16[16,144], index: 4, kind: input, shape index: {}]   ;;  %s2194_s5 = inlined_call_operand.vmem [shape: f32[16,1], index: 5, kind: input, shape index: {}]   ;;  %s2195_s6 = inlined_call_operand.vmem [shape: f32[16,1], index: 6, kind: input, shape index: {}]   ;;  %s2196_s7 = inlined_call_operand.vmem [shape: bf16[8,144], index: 7, kind: input, shape index: {}]   ;;  %s2197_s8 = inlined_call_operand.vmem [shape: f32[8,1], index: 8, kind: input, shape index: {}]   ;;  %s2198_s9 = inlined_call_operand.vmem [shape: f32[8,1], index: 9, kind: input, shape index: {}]   ;;  %s2199_s10 = inlined_call_operand.vmem [shape: bf16[8,72], index: 10, kind: input, shape index: {}]   ;;  %s2200_s11 = inlined_call_operand.vmem [shape: f32[16,1], index: 11, kind: input, shape index: {}]   ;;  %s2201_s12 = inlined_call_operand.vmem [shape: f32[16,1], index: 12, kind: input, shape index: {}]   ;;  %s2202_s13 = inlined_call_operand.vmem [shape: bf16[32,16], index: 13, kind: input, shape index: {}]   ;;  %s2203_s14 = inlined_call_operand.vmem [shape: f32[2,32,256], index: 14, kind: output, shape index: {}]  }
   0x1 LB: > { %s1351_s30 = sadd.s32 4294967295, %s1410_s29   ;;  %p1355_p0 = scmp.ge.s32.totalorder %s1410_s29, 1  ;;  %s1410_s29 = sphi %s1496_s29, %s24_s29  }
   0x2   : > { %p412_p1 = scmp.lt.s32.totalorder %s1410_s29, 3 }
   0x4   : > { %p413_p2 = pnand %p1355_p0, %p412_p1 }
   0x5   : > { %p458_p3 = scmp.lt.s32.totalorder (!%p413_p2), %s1351_s30, 1  ;;  %s2214_s27 = smov (!%p413_p2), 112  }
   0x6   : > { %416 = sbr.rel (%p413_p2) target bundleno = 1270 (0x4f6), region = 76  ;;  %s1414_s28 = smov (!%p413_p2), 113  }
   0x7   : > { %s2212_s15 = smov (!%p413_p2), 127   ;;  %s2208_s16 = smov (!%p413_p2), 1  }
   0x8   : > { %s2210_s17 = smov (!%p413_p2), 15   ;;  %s2206_s18 = smov (!%p413_p2), 16  }
   0x9   : > { %s2204_s19 = smov (!%p413_p2), 17   ;;  %s1420_s20 = smov (!%p413_p2), 111  }
   0xa   : > { %s2216_s25 = smov (!%p413_p2), 16  }
   0xb   : > { %v493_v0 = vld [vmem:[%s2192_s3] sm:$0xff]  ;;  %v1412_v2 = vmov 0   ;;  %v494_v3 = vld [vmem:[%s2192_s3 + $0x8] sm:$0xff]  ;;  %s2223_s30 = smov (!%p458_p3, %s1351_s30), 1  ;;  %vm744_vm0 = vcmask 130048   ;;  %v521_v32 = vlaneseq  ;;  %vm1121_vm9 = vcmask 1043456  }
   0xc   : > { %v477_v1 = vld [vmem:[%s2191_s2] sm:$0xff]  ;;  %1396 = vset.pattern.permute.xlu1 %v1412_v2  ;;  %1395 = vset.pattern.permute.xlu0 %v1412_v2  ;;  %v478_v4 = vld [vmem:[%s2191_s2 + $0x8] sm:$0xff]  ;;  %s1376_s23 = sshll.u32 %s2223_s30, 5  ;;  %s1377_s24 = sshll.u32 %s2223_s30, 6  ;;  %vm1117_vm10 = vcmask 588800  }
   0xd   : > { %497 = vperm.xlu1 %1396, %v493_v0   ;;  %481 = vperm.xlu0 %1395, %v477_v1   ;;  %s462_s26 = scalar_lea.vmem %s2189_s0, %s1376_s23  ;;  %v1399_v27 = vld [vmem:[%s2193_s4 + $0x4] ss:$8 sps:$4 sm:$0xff]   ;;  %v1628_v33 = vshrl.u32 %v521_v32, 7  ;;  %v1630_v35 = vand.u32 127, %v521_v32  ;;  %s2218_s23 = smov 112  }
   0xe   : > { %v1524_v5 = vld [vmem:[%s462_s26] sm:$0xff]  ;;  %v1526_v6 = vld [vmem:[%s462_s26 + $0x8] sm:$0xff]  ;;  %v1530_v11 = vld [vmem:[%s462_s26 + $0x10] sm:$0xff]  ;;  %1364 = vmatprep.mubr.msk.bf16.mxu0 %vm744_vm0, %v1399_v27  ;;  %s2103_s21 = scalar_lea.vmem %s2203_s14, %s1377_s24  ;;  %s2221_s30 = smov 1  }
   0xf   : > { %v1532_v12 = vld [vmem:[%s462_s26 + $0x18] sm:$0xff]  ;;  %v791_v28 = vld [vmem:[%s2194_s5] sm:$0xff]  ;;  %v792_v29 = vld [vmem:[%s2194_s5 + $0x8] sm:$0xff]  ;;  %v680_v36 = vsub.s32 7, %v1628_v33  ;;  %vm673_vm1 = vcmp.lt.s32.totalorder %v1630_v35, 112  ;;  %v655_v49 = vsub.s32 6, %v1628_v33 }
  0x10   : > { %v807_v30 = vld [vmem:[%s2195_s6] sm:$0xff]  ;;  %v808_v31 = vld [vmem:[%s2195_s6 + $0x8] sm:$0xff]  ;;  %vm648_vm2 = vcmp.lt.s32.totalorder %v1630_v35, 113  ;;  %vm623_vm3 = vcmp.lt.s32.totalorder %v1630_v35, 127  ;;  %vm598_vm4 = vcmp.lt.s32.totalorder %v1630_v35, 1  ;;  %vm573_vm5 = vcmp.lt.s32.totalorder %v1630_v35, 15 }
  0x11   : > { %502 = vperm.xlu1 %1396, %v494_v3   ;;  %486 = vperm.xlu0 %1395, %v478_v4   ;;  %v1636_v37 = vld [vmem:[%s2190_s1] sm:$0xff]  ;;  %v1641_v38 = vld [vmem:[%s2190_s1 + $0x8] sm:$0xff]  ;;  %v630_v3 = vsub.s32 5, %v1628_v33  ;;  %vm548_vm6 = vcmp.lt.s32.totalorder %v1630_v35, 16  ;;  %vm523_vm7 = vcmp.lt.s32.totalorder %v1630_v35, 17  ;;  %vm698_vm8 = vcmp.lt.s32.totalorder %v1630_v35, 111 }
  0x12   : > { %v1645_v41 = vrot.slane %v1636_v37, %v680_v36  ;;  %v1648_v42 = vrot.slane %v1641_v38, %v680_v36  ;;  %v1665_v58 = vrot.slane %v1636_v37, %v655_v49  ;;  %v1668_v59 = vrot.slane %v1641_v38, %v655_v49  ;;  %s2217_s26 = smov 17  }
  0x88   : > { %v498_v7 = vpop.permute.xlu1 %497  ;;  %v482_v8 = vpop.permute.xlu0 %481 }
  0x89   : > { %v489_v9 = vmul.f32 %v482_v8, %v1524_v5  ;;  %v490_v10 = vmul.f32 %v482_v8, %v1526_v6 }
  0x8b   : > { %v505_v13 = vadd.f32 %v498_v7, %v489_v9  ;;  %v506_v15 = vadd.f32 %v498_v7, %v490_v10 }
  0x8c   : > { %v487_v14 = vpop.permute.xlu0 %486  ;;  %v503_v19 = vpop.permute.xlu1 %502 }
  0x8d   : > { %v1534_v16 = vmax.f32 %v505_v13, 0.0  ;;  %v491_v17 = vmul.f32 %v487_v14, %v1530_v11  ;;  %v492_v18 = vmul.f32 %v487_v14, %v1532_v12  ;;  %v1540_v22 = vmax.f32 %v506_v15, 0.0 }
  0x8f   : > { %v507_v20 = vadd.f32 %v503_v19, %v491_v17  ;;  %v508_v21 = vadd.f32 %v503_v19, %v492_v18  ;;  %665 = vrot.lane.b32.xlu0 %v1534_v16, %s2214_s27  ;;  %v1685_v17 = vrot.slane %v1636_v37, %v630_v3  ;;  %v1688_v18 = vrot.slane %v1641_v38, %v630_v3 }
  0x90   : > { %v555_v3 = vsub.s32 1, %v1628_v33 }
  0x91   : > { %v1542_v23 = vmax.f32 %v507_v20, 0.0  ;;  %v1544_v24 = vmax.f32 %v508_v21, 0.0 }
  0x93   : > { %667 = vrot.lane.b32.xlu1 %v1542_v23, %s2214_s27  ;;  %669 = vrot.lane.b32.xlu0 %v1540_v22, %s2214_s27  ;;  %v724_v25 = vpack.c.bf16 %v1544_v24, %v1540_v22  ;;  %v723_v26 = vpack.c.bf16 %v1542_v23, %v1534_v16 }
  0x97   : > { %671 = vrot.lane.b32.xlu1 %v1544_v24, %s2214_s27  ;;  %640 = vrot.lane.b32.xlu0 %v1534_v16, %s1414_s28 }
  0x9b   : > { %642 = vrot.lane.b32.xlu1 %v1542_v23, %s1414_s28  ;;  %644 = vrot.lane.b32.xlu0 %v1540_v22, %s1414_s28 }
  0x9f   : > { %646 = vrot.lane.b32.xlu1 %v1544_v24, %s1414_s28  ;;  %615 = vrot.lane.b32.xlu0 %v1534_v16, %s2212_s15 }
  0xa3   : > { %617 = vrot.lane.b32.xlu1 %v1542_v23, %s2212_s15  ;;  %619 = vrot.lane.b32.xlu0 %v1540_v22, %s2212_s15 }
  0xa7   : > { %621 = vrot.lane.b32.xlu1 %v1544_v24, %s2212_s15  ;;  %590 = vrot.lane.b32.xlu0 %v1534_v16, %s2208_s16 }
  0xab   : > { %592 = vrot.lane.b32.xlu1 %v1542_v23, %s2208_s16  ;;  %594 = vrot.lane.b32.xlu0 %v1540_v22, %s2208_s16 }
  0xaf   : > { %596 = vrot.lane.b32.xlu1 %v1544_v24, %s2208_s16  ;;  %565 = vrot.lane.b32.xlu0 %v1534_v16, %s2210_s17 }
  0xb3   : > { %567 = vrot.lane.b32.xlu1 %v1542_v23, %s2210_s17  ;;  %569 = vrot.lane.b32.xlu0 %v1540_v22, %s2210_s17 }
  0xb7   : > { %571 = vrot.lane.b32.xlu1 %v1544_v24, %s2210_s17  ;;  %540 = vrot.lane.b32.xlu0 %v1534_v16, %s2206_s18 }
  0xbb   : > { %542 = vrot.lane.b32.xlu1 %v1542_v23, %s2206_s18  ;;  %544 = vrot.lane.b32.xlu0 %v1540_v22, %s2206_s18 }
  0xbf   : > { %546 = vrot.lane.b32.xlu1 %v1544_v24, %s2206_s18  ;;  %513 = vrot.lane.b32.xlu0 %v1534_v16, %s2204_s19  ;;  %s2219_s18 = smov 127  }
  0xc3   : > { %515 = vrot.lane.b32.xlu1 %v1542_v23, %s2204_s19  ;;  %517 = vrot.lane.b32.xlu0 %v1540_v22, %s2204_s19 }
  0xc7   : > { %519 = vrot.lane.b32.xlu1 %v1544_v24, %s2204_s19  ;;  %690 = vrot.lane.b32.xlu0 %v1534_v16, %s1420_s20 }
  0xcb   : > { %692 = vrot.lane.b32.xlu1 %v1542_v23, %s1420_s20  ;;  %694 = vrot.lane.b32.xlu0 %v1540_v22, %s1420_s20 }
  0xcf   : > { %696 = vrot.lane.b32.xlu1 %v1544_v24, %s1420_s20  ;;  %795 = vperm.xlu0 %1395, %v791_v28  }
  0xd3   : > { %800 = vperm.xlu1 %1396, %v792_v29   ;;  %811 = vperm.xlu0 %1395, %v807_v30   ;;  %v605_v30 = vsub.s32 3, %v1628_v33 }
  0xd7   : > { %816 = vperm.xlu1 %1396, %v808_v31  }
 0x101   : > { %v666_v34 = vpop.permute.xlu0 %665 }
 0x105   : > { %v668_v39 = vpop.permute.xlu1 %667  ;;  %v670_v40 = vpop.permute.xlu0 %669 }
 0x106   : > { %v674_v43 = vsel %vm673_vm1, %v666_v34, %v670_v40  ;;  %v676_v44 = vsel %vm673_vm1, %v670_v40, %v666_v34 }
 0x107   : > { %v686_v50 = vmul.f32 %v1645_v41, %v674_v43  ;;  %v687_v52 = vmul.f32 %v1648_v42, %v676_v44 }
 0x109   : > { %v672_v45 = vpop.permute.xlu1 %671  ;;  %v641_v46 = vpop.permute.xlu0 %640 }
 0x10a   : > { %v675_v47 = vsel %vm673_vm1, %v668_v39, %v672_v45  ;;  %v677_v48 = vsel %vm673_vm1, %v672_v45, %v668_v39  ;;  %v1705_v45 = vrot.slane %v1636_v37, %v605_v30 }
 0x10b   : > { %v688_v51 = vmul.f32 %v1645_v41, %v675_v47  ;;  %v689_v53 = vmul.f32 %v1648_v42, %v677_v48 }
 0x10d   : > { %v643_v54 = vpop.permute.xlu1 %642  ;;  %v645_v55 = vpop.permute.xlu0 %644  ;;  %v730_v56 = vpack.c.bf16 %v689_v53, %v687_v52  ;;  %v729_v57 = vpack.c.bf16 %v688_v51, %v686_v50  ;;  %v580_v53 = vsub.s32 2, %v1628_v33 }
 0x10e   : > { %v649_v60 = vsel %vm648_vm2, %v641_v46, %v645_v55  ;;  %v651_v61 = vsel %vm648_vm2, %v645_v55, %v641_v46  ;;  %v1708_v46 = vrot.slane %v1641_v38, %v605_v30 }
 0x10f   : > { %748 = vmatprep.subr.bf16.mxu0 %v730_v56  ;;  %v661_v4 = vmul.f32 %v1665_v58, %v649_v60  ;;  %v662_v7 = vmul.f32 %v1668_v59, %v651_v61  ;;  %v1731_v61 = vrot.slane %v1636_v37, %v580_v53 }
 0x110   : > { %749 = vmatpush1.bf16.msra.mxu0 %v729_v57 }
 0x111   : > { %v647_v62 = vpop.permute.xlu1 %646  ;;  %v616_v63 = vpop.permute.xlu0 %615 }
 0x112   : > { %v650_v0 = vsel %vm648_vm2, %v643_v54, %v647_v62  ;;  %v652_v1 = vsel %vm648_vm2, %v647_v62, %v643_v54  ;;  %v1734_v62 = vrot.slane %v1641_v38, %v580_v53 }
 0x113   : > { %v663_v8 = vmul.f32 %v1665_v58, %v650_v0  ;;  %v664_v9 = vmul.f32 %v1668_v59, %v652_v1 }
 0x115   : > { %v618_v10 = vpop.permute.xlu1 %617  ;;  %v620_v13 = vpop.permute.xlu0 %619  ;;  %v728_v14 = vpack.c.bf16 %v664_v9, %v662_v7  ;;  %v727_v15 = vpack.c.bf16 %v663_v8, %v661_v4 }
 0x116   : > { %v624_v19 = vsel %vm623_vm3, %v616_v63, %v620_v13  ;;  %v626_v20 = vsel %vm623_vm3, %v620_v13, %v616_v63 }
 0x117   : > { %750 = vmatprep.subr.bf16.mxu0 %v728_v14  ;;  %v636_v31 = vmul.f32 %v1685_v17, %v624_v19  ;;  %v637_v32 = vmul.f32 %v1688_v18, %v626_v20  ;;  %v1751_v19 = vrot.slane %v1636_v37, %v555_v3  ;;  %v1754_v20 = vrot.slane %v1641_v38, %v555_v3 }
 0x118   : > { %751 = vmatpush1.bf16.msra.mxu0 %v727_v15 }
 0x119   : > { %v622_v21 = vpop.permute.xlu1 %621  ;;  %v591_v27 = vpop.permute.xlu0 %590 }
 0x11a   : > { %v625_v28 = vsel %vm623_vm3, %v618_v10, %v622_v21  ;;  %v627_v29 = vsel %vm623_vm3, %v622_v21, %v618_v10 }
 0x11b   : > { %v638_v34 = vmul.f32 %v1685_v17, %v625_v28  ;;  %v639_v36 = vmul.f32 %v1688_v18, %v627_v29 }
 0x11d   : > { %v593_v39 = vpop.permute.xlu1 %592  ;;  %v595_v40 = vpop.permute.xlu0 %594  ;;  %v726_v43 = vpack.c.bf16 %v639_v36, %v637_v32  ;;  %v725_v44 = vpack.c.bf16 %v638_v34, %v636_v31  ;;  %v530_v32 = vsub.s32 0, %v1628_v33 }
 0x11e   : > { %v599_v47 = vsel %vm598_vm4, %v591_v27, %v595_v40  ;;  %v601_v48 = vsel %vm598_vm4, %v595_v40, %v591_v27 }
 0x11f   : > { %752 = vmatprep.subr.bf16.mxu0 %v726_v43  ;;  %v611_v54 = vmul.f32 %v1705_v45, %v601_v48  ;;  %v612_v55 = vmul.f32 %v1708_v46, %v599_v47 }
 0x120   : > { %753 = vmatpush1.bf16.msra.mxu0 %v725_v44 }
 0x121   : > { %v597_v49 = vpop.permute.xlu1 %596  ;;  %754 = vmatprep.subr.bf16.mxu0 %v724_v25  ;;  %v566_v50 = vpop.permute.xlu0 %565 }
 0x122   : > { %v600_v51 = vsel %vm598_vm4, %v593_v39, %v597_v49  ;;  %v602_v52 = vsel %vm598_vm4, %v597_v49, %v593_v39  ;;  %v1771_v49 = vrot.slane %v1636_v37, %v530_v32 }
 0x123   : > { %v613_v56 = vmul.f32 %v1705_v45, %v602_v52  ;;  %v614_v57 = vmul.f32 %v1708_v46, %v600_v51 }
 0x124   : > { %755 = vmatpush1.bf16.msra.mxu0 %v723_v26 }
 0x125   : > { %v568_v22 = vpop.permute.xlu1 %567  ;;  %v570_v24 = vpop.permute.xlu0 %569  ;;  %v722_v25 = vpack.c.bf16 %v614_v57, %v612_v55  ;;  %v721_v60 = vpack.c.bf16 %v613_v56, %v611_v54 }
 0x126   : > { %v574_v63 = vsel %vm573_vm5, %v566_v50, %v570_v24  ;;  %v576_v16 = vsel %vm573_vm5, %v570_v24, %v566_v50  ;;  %v1774_v50 = vrot.slane %v1641_v38, %v530_v32 }
 0x127   : > { %756 = vmatprep.subr.bf16.mxu0 %v722_v25  ;;  %v586_v4 = vmul.f32 %v1731_v61, %v576_v16  ;;  %v587_v7 = vmul.f32 %v1734_v62, %v574_v63  ;;  %v1792_v63 = vld [vmem:[%s2190_s1 + $0x10] ss:$0 sm:$0xff]  ;;  %v1797_v16 = vld [vmem:[%s2190_s1 + $0x18] ss:$0 sm:$0xff] }
 0x128   : > { %757 = vmatpush1.bf16.msra.mxu0 %v721_v60 }
 0x129   : > { %v572_v23 = vpop.permute.xlu1 %571  ;;  %v541_v26 = vpop.permute.xlu0 %540 }
 0x12a   : > { %v575_v0 = vsel %vm573_vm5, %v568_v22, %v572_v23  ;;  %v577_v1 = vsel %vm573_vm5, %v572_v23, %v568_v22 }
 0x12b   : > { %v588_v8 = vmul.f32 %v1731_v61, %v577_v1  ;;  %v589_v9 = vmul.f32 %v1734_v62, %v575_v0 }
 0x12d   : > { %v543_v10 = vpop.permute.xlu1 %542  ;;  %v545_v13 = vpop.permute.xlu0 %544  ;;  %v720_v14 = vpack.c.bf16 %v589_v9, %v587_v7  ;;  %v719_v15 = vpack.c.bf16 %v588_v8, %v586_v4 }
 0x12e   : > { %v549_v21 = vsel %vm548_vm6, %v541_v26, %v545_v13  ;;  %v551_v27 = vsel %vm548_vm6, %v545_v13, %v541_v26 }
 0x12f   : > { %758 = vmatprep.subr.bf16.mxu0 %v720_v14  ;;  %v561_v34 = vmul.f32 %v1751_v19, %v551_v27  ;;  %v562_v36 = vmul.f32 %v1754_v20, %v549_v21  ;;  %v1397_v14 = vld [vmem:[%s2193_s4] ss:$8 sps:$4 sm:$0xff]  }
 0x130   : > { %759 = vmatpush1.bf16.msra.mxu0 %v719_v15 }
 0x131   : > { %v547_v28 = vpop.permute.xlu1 %546  ;;  %v514_v29 = vpop.permute.xlu0 %513 }
 0x132   : > { %v550_v30 = vsel %vm548_vm6, %v543_v10, %v547_v28  ;;  %v552_v31 = vsel %vm548_vm6, %v547_v28, %v543_v10 }
 0x133   : > { %v563_v39 = vmul.f32 %v1751_v19, %v552_v31  ;;  %v564_v40 = vmul.f32 %v1754_v20, %v550_v30 }
 0x135   : > { %v516_v43 = vpop.permute.xlu1 %515  ;;  %v518_v44 = vpop.permute.xlu0 %517  ;;  %v718_v47 = vpack.c.bf16 %v564_v40, %v562_v36  ;;  %v717_v48 = vpack.c.bf16 %v563_v39, %v561_v34 }
 0x136   : > { %v524_v33 = vsel %vm523_vm7, %v514_v29, %v518_v44  ;;  %v526_v51 = vsel %vm523_vm7, %v518_v44, %v514_v29 }
 0x137   : > { %760 = vmatprep.subr.bf16.mxu0 %v718_v47  ;;  %v536_v55 = vmul.f32 %v1771_v49, %v526_v51  ;;  %v537_v38 = vmul.f32 %v1774_v50, %v524_v33 }
 0x138   : > { %761 = vmatpush1.bf16.msra.mxu0 %v717_v48 }
 0x139   : > { %v520_v52 = vpop.permute.xlu1 %519  ;;  %v691_v53 = vpop.permute.xlu0 %690 }
 0x13a   : > { %v525_v54 = vsel %vm523_vm7, %v516_v43, %v520_v52  ;;  %v527_v37 = vsel %vm523_vm7, %v520_v52, %v516_v43 }
 0x13b   : > { %v538_v56 = vmul.f32 %v1771_v49, %v527_v37  ;;  %v539_v57 = vmul.f32 %v1774_v50, %v525_v54 }
 0x13d   : > { %v693_v22 = vpop.permute.xlu1 %692  ;;  %v695_v24 = vpop.permute.xlu0 %694  ;;  %v716_v25 = vpack.c.bf16 %v539_v57, %v537_v38  ;;  %v715_v60 = vpack.c.bf16 %v538_v56, %v536_v55  ;;  %v1900_v55 = vld [vmem:[%s2196_s7] sm:$0xff] }
 0x13e   : > { %v699_v23 = vsel %vm698_vm8, %v691_v53, %v695_v24  ;;  %v701_v26 = vsel %vm698_vm8, %v695_v24, %v691_v53  ;;  %v1366_v38 = vcombine.high %v1900_v55, %v1900_v55  ;;  %v1024_v56 = vld [vmem:[%s2197_s8] sm:$0xff] }
 0x13f   : > { %762 = vmatprep.subr.bf16.mxu0 %v716_v25  ;;  %v711_v4 = vmul.f32 %v1792_v63, %v699_v23  ;;  %v712_v7 = vmul.f32 %v1797_v16, %v701_v26  ;;  %v1169_v57 = vld [vmem:[%s2200_s11] sm:$0xff]  ;;  %v1170_v25 = vld [vmem:[%s2200_s11 + $0x8] sm:$0xff] }
 0x140   : > { %763 = vmatpush1.bf16.msra.mxu0 %v715_v60  ;;  %1367 = vmatprep.mubr.msk.bf16.mxu1 %vm744_vm0, %v1366_v38  ;;  %v1185_v24 = vld [vmem:[%s2201_s12] sm:$0xff]  ;;  %v1186_v60 = vld [vmem:[%s2201_s12 + $0x8] sm:$0xff] }
 0x141   : > { %v697_v0 = vpop.permute.xlu1 %696 }
 0x142   : > { %v700_v1 = vsel %vm698_vm8, %v693_v22, %v697_v0  ;;  %v702_v3 = vsel %vm698_vm8, %v697_v0, %v693_v22  ;;  %v1032_v22 = vld [vmem:[%s2198_s9] sm:$0xff] }
 0x143   : > { %v713_v8 = vmul.f32 %v1792_v63, %v700_v1  ;;  %v714_v9 = vmul.f32 %v1797_v16, %v702_v3 }
 0x145   : > { %v732_v10 = vpack.c.bf16 %v714_v9, %v712_v7  ;;  %v731_v13 = vpack.c.bf16 %v713_v8, %v711_v4 }
 0x147   : > { %778 = vmatprep.subr.bf16.mxu0 %v732_v10 }
 0x148   : > { %779 = vmatpush2.bf16.msra.mxu0 %v731_v13 }
 0x14a   : > { %v796_v15 = vpop.permute.xlu0 %795 }
 0x14b   : > { %781 = vmatmul.mubr.bf16.vlgmr.msra.gmra.mxu0 %v1397_v14 }
 0x14c   : > { %1160 = vmatprep.mubr.bf16.mxu0 %v1412_v2 }
 0x14e   : > { %v801_v21 = vpop.permute.xlu1 %800  ;;  %v812_v29 = vpop.permute.xlu0 %811 }
 0x152   : > { %v817_v40 = vpop.permute.xlu1 %816 }
 0x20b   : > { %v1815_v27 = vpop.f32.mrf.mxu0 }
 0x20c   : > { %v803_v28 = vmul.f32 %v796_v15, %v1815_v27 }
 0x20d   : > { %v1818_v30 = vpop.f32.mrf.mxu0 }
 0x20e   : > { %v819_v31 = vadd.f32 %v812_v29, %v803_v28  ;;  %v804_v32 = vmul.f32 %v796_v15, %v1818_v30 }
 0x20f   : > { %v1821_v34 = vpop.f32.mrf.mxu0 }
 0x210   : > { %v1823_v36 = vmax.f32 %v819_v31, 0.0  ;;  %v805_v39 = vmul.f32 %v801_v21, %v1821_v34  ;;  %v820_v44 = vadd.f32 %v812_v29, %v804_v32 }
 0x211   : > { %v1826_v43 = vpop.f32.mrf.mxu0 }
 0x212   : > { %v821_v47 = vadd.f32 %v817_v40, %v805_v39  ;;  %v806_v48 = vmul.f32 %v801_v21, %v1826_v43  ;;  %923 = vrot.lane.b32.xlu0 %v1823_v36, %s2214_s27  ;;  %v1833_v52 = vmax.f32 %v820_v44, 0.0 }
 0x214   : > { %v1831_v33 = vmax.f32 %v821_v47, 0.0  ;;  %v822_v51 = vadd.f32 %v817_v40, %v806_v48 }
 0x216   : > { %v1835_v53 = vmax.f32 %v822_v51, 0.0  ;;  %907 = vrot.lane.b32.xlu0 %v1823_v36, %s1414_s28  ;;  %925 = vrot.lane.b32.xlu1 %v1831_v33, %s2214_s27  ;;  %v963_v54 = vpack.c.bf16 %v1831_v33, %v1823_v36 }
 0x218   : > { %v964_v37 = vpack.c.bf16 %v1835_v53, %v1833_v52 }
 0x21a   : > { %891 = vrot.lane.b32.xlu0 %v1823_v36, %s2212_s15  ;;  %909 = vrot.lane.b32.xlu1 %v1831_v33, %s1414_s28 }
 0x21e   : > { %875 = vrot.lane.b32.xlu0 %v1823_v36, %s2208_s16  ;;  %893 = vrot.lane.b32.xlu1 %v1831_v33, %s2212_s15 }
 0x222   : > { %859 = vrot.lane.b32.xlu0 %v1823_v36, %s2210_s17  ;;  %877 = vrot.lane.b32.xlu1 %v1831_v33, %s2208_s16 }
 0x226   : > { %843 = vrot.lane.b32.xlu0 %v1823_v36, %s2216_s25  ;;  %861 = vrot.lane.b32.xlu1 %v1831_v33, %s2210_s17 }
 0x22a   : > { %827 = vrot.lane.b32.xlu0 %v1823_v36, %s2217_s26  ;;  %845 = vrot.lane.b32.xlu1 %v1831_v33, %s2216_s25 }
 0x22e   : > { %927 = vrot.lane.b32.xlu0 %v1833_v52, %s2214_s27  ;;  %829 = vrot.lane.b32.xlu1 %v1831_v33, %s2217_s26 }
 0x232   : > { %911 = vrot.lane.b32.xlu0 %v1833_v52, %s1414_s28  ;;  %929 = vrot.lane.b32.xlu1 %v1835_v53, %s2214_s27 }
 0x236   : > { %895 = vrot.lane.b32.xlu0 %v1833_v52, %s2212_s15  ;;  %913 = vrot.lane.b32.xlu1 %v1835_v53, %s1414_s28 }
 0x23a   : > { %939 = vrot.lane.b32.xlu0 %v1823_v36, %s1420_s20  ;;  %897 = vrot.lane.b32.xlu1 %v1835_v53, %s2212_s15 }
 0x23e   : > { %879 = vrot.lane.b32.xlu0 %v1833_v52, %s2208_s16  ;;  %941 = vrot.lane.b32.xlu1 %v1831_v33, %s1420_s20 }
 0x242   : > { %863 = vrot.lane.b32.xlu0 %v1833_v52, %s2210_s17  ;;  %881 = vrot.lane.b32.xlu1 %v1835_v53, %s2208_s16 }
 0x246   : > { %847 = vrot.lane.b32.xlu0 %v1833_v52, %s2216_s25  ;;  %865 = vrot.lane.b32.xlu1 %v1835_v53, %s2210_s17 }
 0x24a   : > { %831 = vrot.lane.b32.xlu0 %v1833_v52, %s2217_s26  ;;  %849 = vrot.lane.b32.xlu1 %v1835_v53, %s2216_s25 }
 0x24e   : > { %943 = vrot.lane.b32.xlu0 %v1833_v52, %s1420_s20  ;;  %833 = vrot.lane.b32.xlu1 %v1835_v53, %s2217_s26 }
 0x252   : > { %1027 = vperm.xlu0 %1395, %v1024_v56   ;;  %945 = vrot.lane.b32.xlu1 %v1835_v53, %s1420_s20 }
 0x256   : > { %1173 = vperm.xlu0 %1395, %v1169_v57   ;;  %1035 = vperm.xlu1 %1396, %v1032_v22  }
 0x25a   : > { %1189 = vperm.xlu0 %1395, %v1185_v24   ;;  %1178 = vperm.xlu1 %1396, %v1170_v25  }
 0x25e   : > { %1194 = vperm.xlu1 %1396, %v1186_v60  }
 0x284   : > { %v924_v23 = vpop.permute.xlu0 %923 }
 0x288   : > { %v908_v26 = vpop.permute.xlu0 %907  ;;  %v926_v0 = vpop.permute.xlu1 %925 }
 0x28c   : > { %v892_v1 = vpop.permute.xlu0 %891  ;;  %v910_v3 = vpop.permute.xlu1 %909 }
 0x290   : > { %v876_v4 = vpop.permute.xlu0 %875  ;;  %v894_v7 = vpop.permute.xlu1 %893 }
 0x294   : > { %v1929_v8 = vpop.permute.xlu0 %859  ;;  %v878_v9 = vpop.permute.xlu1 %877 }
 0x298   : > { %v1931_v10 = vpop.permute.xlu0 %843  ;;  %v1933_v13 = vpop.permute.xlu1 %861 }
 0x29c   : > { %v1935_v14 = vpop.permute.xlu0 %827  ;;  %v1937_v15 = vpop.permute.xlu1 %845 }
 0x2a0   : > { %v928_v21 = vpop.permute.xlu0 %927  ;;  %v1939_v28 = vpop.permute.xlu1 %829 }
 0x2a1   : > { %v931_v29 = vsel %vm673_vm1, %v924_v23, %v928_v21  ;;  %v933_v31 = vsel %vm673_vm1, %v928_v21, %v924_v23 }
 0x2a2   : > { %v935_v47 = vmul.f32 %v931_v29, %v1645_v41  ;;  %v936_v51 = vmul.f32 %v933_v31, %v1648_v42 }
 0x2a4   : > { %v912_v32 = vpop.permute.xlu0 %911  ;;  %v930_v39 = vpop.permute.xlu1 %929 }
 0x2a5   : > { %v932_v40 = vsel %vm673_vm1, %v926_v0, %v930_v39  ;;  %v934_v44 = vsel %vm673_vm1, %v930_v39, %v926_v0  ;;  %v915_v56 = vsel %vm648_vm2, %v908_v26, %v912_v32  ;;  %v917_v57 = vsel %vm648_vm2, %v912_v32, %v908_v26 }
 0x2a6   : > { %v937_v48 = vmul.f32 %v932_v40, %v1645_v41  ;;  %v938_v38 = vmul.f32 %v934_v44, %v1648_v42  ;;  %v919_v21 = vmul.f32 %v915_v56, %v1665_v58  ;;  %v920_v29 = vmul.f32 %v917_v57, %v1668_v59 }
 0x2a8   : > { %v896_v22 = vpop.permute.xlu0 %895  ;;  %v914_v24 = vpop.permute.xlu1 %913  ;;  %v970_v25 = vpack.c.bf16 %v938_v38, %v936_v51  ;;  %v969_v60 = vpack.c.bf16 %v937_v48, %v935_v47 }
 0x2a9   : > { %v916_v23 = vsel %vm648_vm2, %v910_v3, %v914_v24  ;;  %v918_v0 = vsel %vm648_vm2, %v914_v24, %v910_v3  ;;  %v899_v26 = vsel %vm623_vm3, %v892_v1, %v896_v22  ;;  %v901_v32 = vsel %vm623_vm3, %v896_v22, %v892_v1 }
 0x2aa   : > { %v921_v31 = vmul.f32 %v916_v23, %v1665_v58  ;;  %v922_v39 = vmul.f32 %v918_v0, %v1668_v59  ;;  %983 = vmatprep.subr.bf16.mxu1 %v970_v25  ;;  %v903_v38 = vmul.f32 %v899_v26, %v1685_v17  ;;  %v904_v56 = vmul.f32 %v901_v32, %v1688_v18 }
 0x2ab   : > { %984 = vmatpush1.bf16.msra.mxu1 %v969_v60 }
 0x2ac   : > { %v1969_v40 = vpop.permute.xlu0 %939  ;;  %v898_v44 = vpop.permute.xlu1 %897  ;;  %v968_v3 = vpack.c.bf16 %v922_v39, %v920_v29  ;;  %v967_v47 = vpack.c.bf16 %v921_v31, %v919_v21 }
 0x2ad   : > { %v900_v48 = vsel %vm623_vm3, %v894_v7, %v898_v44  ;;  %v902_v51 = vsel %vm623_vm3, %v898_v44, %v894_v7 }
 0x2ae   : > { %v905_v57 = vmul.f32 %v900_v48, %v1685_v17  ;;  %v906_v1 = vmul.f32 %v902_v51, %v1688_v18  ;;  %985 = vmatprep.subr.bf16.mxu1 %v968_v3 }
 0x2af   : > { %986 = vmatpush1.bf16.msra.mxu1 %v967_v47 }
 0x2b0   : > { %v880_v22 = vpop.permute.xlu0 %879  ;;  %v1979_v24 = vpop.permute.xlu1 %941  ;;  %v966_v25 = vpack.c.bf16 %v906_v1, %v904_v56  ;;  %v965_v60 = vpack.c.bf16 %v905_v57, %v903_v38 }
 0x2b1   : > { %v883_v23 = vsel %vm598_vm4, %v876_v4, %v880_v22  ;;  %v885_v7 = vsel %vm598_vm4, %v880_v22, %v876_v4 }
 0x2b2   : > { %987 = vmatprep.subr.bf16.mxu1 %v966_v25  ;;  %v887_v39 = vmul.f32 %v885_v7, %v1705_v45  ;;  %v888_v26 = vmul.f32 %v883_v23, %v1708_v46 }
 0x2b3   : > { %988 = vmatpush1.bf16.msra.mxu1 %v965_v60 }
 0x2b4   : > { %v864_v0 = vpop.permute.xlu0 %863  ;;  %v882_v21 = vpop.permute.xlu1 %881  ;;  %989 = vmatprep.subr.bf16.mxu1 %v964_v37 }
 0x2b5   : > { %v884_v29 = vsel %vm598_vm4, %v878_v9, %v882_v21  ;;  %v886_v31 = vsel %vm598_vm4, %v882_v21, %v878_v9  ;;  %v867_v44 = vsel %vm573_vm5, %v1929_v8, %v864_v0  ;;  %v869_v52 = vsel %vm573_vm5, %v864_v0, %v1929_v8 }
 0x2b6   : > { %v889_v32 = vmul.f32 %v886_v31, %v1705_v45  ;;  %v890_v4 = vmul.f32 %v884_v29, %v1708_v46  ;;  %v871_v51 = vmul.f32 %v869_v52, %v1731_v61  ;;  %v872_v8 = vmul.f32 %v867_v44, %v1734_v62 }
 0x2b7   : > { %990 = vmatpush1.bf16.msra.mxu1 %v963_v54 }
 0x2b8   : > { %v848_v53 = vpop.permute.xlu0 %847  ;;  %v866_v37 = vpop.permute.xlu1 %865  ;;  %v962_v9 = vpack.c.bf16 %v890_v4, %v888_v26  ;;  %v961_v3 = vpack.c.bf16 %v889_v32, %v887_v39 }
 0x2b9   : > { %v868_v47 = vsel %vm573_vm5, %v1933_v13, %v866_v37  ;;  %v870_v48 = vsel %vm573_vm5, %v866_v37, %v1933_v13  ;;  %v851_v33 = vsel %vm548_vm6, %v1931_v10, %v848_v53  ;;  %v853_v54 = vsel %vm548_vm6, %v848_v53, %v1931_v10 }
 0x2ba   : > { %v873_v38 = vmul.f32 %v870_v48, %v1731_v61  ;;  %v874_v36 = vmul.f32 %v868_v47, %v1734_v62  ;;  %991 = vmatprep.subr.bf16.mxu1 %v962_v9  ;;  %v855_v60 = vmul.f32 %v853_v54, %v1751_v19  ;;  %v856_v23 = vmul.f32 %v851_v33, %v1754_v20 }
 0x2bb   : > { %992 = vmatpush1.bf16.msra.mxu1 %v961_v3  ;;  %v1365_v54 = vcombine.low %v1900_v55, %v1900_v55 }
 0x2bc   : > { %v832_v56 = vpop.permute.xlu0 %831  ;;  %v850_v13 = vpop.permute.xlu1 %849  ;;  %v960_v57 = vpack.c.bf16 %v874_v36, %v872_v8  ;;  %v959_v1 = vpack.c.bf16 %v873_v38, %v871_v51 }
 0x2bd   : > { %v852_v22 = vsel %vm548_vm6, %v1937_v15, %v850_v13  ;;  %v854_v25 = vsel %vm548_vm6, %v850_v13, %v1937_v15  ;;  %v835_v0 = vsel %vm523_vm7, %v1935_v14, %v832_v56  ;;  %v837_v21 = vsel %vm523_vm7, %v832_v56, %v1935_v14 }
 0x2be   : > { %v857_v7 = vmul.f32 %v854_v25, %v1751_v19  ;;  %v858_v10 = vmul.f32 %v852_v22, %v1754_v20  ;;  %993 = vmatprep.subr.bf16.mxu1 %v960_v57  ;;  %v839_v4 = vmul.f32 %v837_v21, %v1771_v49  ;;  %v840_v44 = vmul.f32 %v835_v0, %v1774_v50 }
 0x2bf   : > { %994 = vmatpush1.bf16.msra.mxu1 %v959_v1 }
 0x2c0   : > { %v944_v29 = vpop.permute.xlu0 %943  ;;  %v834_v15 = vpop.permute.xlu1 %833  ;;  %v958_v31 = vpack.c.bf16 %v858_v10, %v856_v23  ;;  %v957_v39 = vpack.c.bf16 %v857_v7, %v855_v60 }
 0x2c1   : > { %v836_v26 = vsel %vm523_vm7, %v1939_v28, %v834_v15  ;;  %v838_v32 = vsel %vm523_vm7, %v834_v15, %v1939_v28  ;;  %v947_v53 = vsel %vm698_vm8, %v1969_v40, %v944_v29  ;;  %v949_v37 = vsel %vm698_vm8, %v944_v29, %v1969_v40 }
 0x2c2   : > { %v841_v52 = vmul.f32 %v838_v32, %v1771_v49  ;;  %v842_v14 = vmul.f32 %v836_v26, %v1774_v50  ;;  %995 = vmatprep.subr.bf16.mxu1 %v958_v31  ;;  %v951_v51 = vmul.f32 %v1792_v63, %v947_v53  ;;  %v952_v8 = vmul.f32 %v1797_v16, %v949_v37 }
 0x2c3   : > { %996 = vmatpush1.bf16.msra.mxu1 %v957_v39 }
 0x2c4   : > { %v946_v9 = vpop.permute.xlu1 %945  ;;  %v956_v28 = vpack.c.bf16 %v842_v14, %v840_v44  ;;  %v955_v3 = vpack.c.bf16 %v841_v52, %v839_v4 }
 0x2c5   : > { %v948_v47 = vsel %vm698_vm8, %v1979_v24, %v946_v9  ;;  %v950_v48 = vsel %vm698_vm8, %v946_v9, %v1979_v24 }
 0x2c6   : > { %v953_v38 = vmul.f32 %v1792_v63, %v948_v47  ;;  %v954_v40 = vmul.f32 %v1797_v16, %v950_v48  ;;  %997 = vmatprep.subr.bf16.mxu1 %v956_v28 }
 0x2c7   : > { %998 = vmatpush1.bf16.msra.mxu1 %v955_v3 }
 0x2c8   : > { %v972_v36 = vpack.c.bf16 %v954_v40, %v952_v8  ;;  %v971_v33 = vpack.c.bf16 %v953_v38, %v951_v51 }
 0x2ca   : > { %1013 = vmatprep.subr.bf16.mxu1 %v972_v36 }
 0x2cb   : > { %1014 = vmatpush2.bf16.msra.mxu1 %v971_v33 }
 0x2cd   : > { %v1028_v56 = vpop.permute.xlu0 %1027 }
 0x2ce   : > { %1016 = vmatmul.mubr.bf16.vlgmr.msra.gmra.mxu1 %v1365_v54 }
 0x2cf   : > { %1259 = vmatprep.mubr.bf16.mxu1 %v1412_v2 }
 0x2d1   : > { %v1174_v24 = vpop.permute.xlu0 %1173  ;;  %v1036_v13 = vpop.permute.xlu1 %1035 }
 0x2d2   : > { %v1181_v22 = vmul.f32 %v1174_v24, %v1524_v5  ;;  %v1182_v25 = vmul.f32 %v1174_v24, %v1526_v6  ;;  %v1402_v5 = vld [vmem:[%s2202_s13] sm:$0xff]   ;;  %v1403_v6 = vld [vmem:[%s2202_s13 + $0x8] sm:$0xff]  }
 0x2d5   : > { %v1190_v57 = vpop.permute.xlu0 %1189  ;;  %v1179_v1 = vpop.permute.xlu1 %1178 }
 0x2d6   : > { %v1197_v60 = vadd.f32 %v1190_v57, %v1181_v22  ;;  %v1198_v23 = vadd.f32 %v1190_v57, %v1182_v25  ;;  %v1183_v7 = vmul.f32 %v1179_v1, %v1530_v11  ;;  %v1184_v10 = vmul.f32 %v1179_v1, %v1532_v12 }
 0x2d8   : > { %v1201_v29 = vmax.f32 %v1197_v60, 0.0  ;;  %v1202_v15 = vmax.f32 %v1198_v23, 0.0 }
 0x2d9   : > { %v1195_v55 = vpop.permute.xlu1 %1194 }
 0x2da   : > { %v1199_v0 = vadd.f32 %v1195_v55, %v1183_v7  ;;  %v1200_v21 = vadd.f32 %v1195_v55, %v1184_v10 }
 0x2dc   : > { %v1203_v31 = vmax.f32 %v1199_v0, 0.0  ;;  %v1204_v39 = vmax.f32 %v1200_v21, 0.0 }
 0x2de   : > { %v1205_v26 = vpack.c.bf16 %v1203_v31, %v1201_v29  ;;  %v1206_v32 = vpack.c.bf16 %v1204_v39, %v1202_v15 }
 0x2e0   : > { %1241 = vmatprep.subr.bf16.mxu1 %v1206_v32 }
 0x2e1   : > { %1242 = vmatpush1.bf16.msra.mxu1 %v1205_v26 }
 0x2e4   : > { %1372 = vmatmul.mubr.msk.bf16.vlgmr.msra.gmra.mxu1 %vm744_vm0, %v1402_v5 }
 0x2e5   : > { %1269 = vmatprep.mubr.bf16.mxu1 %v1412_v2 }
 0x2ec   : > { %1373 = vmatmul.mubr.msk.bf16.gmra.mxu1 %vm744_vm0, %v1403_v6 }
 0x38e   : > { %v1017_v11 = vpop.f32.mrf.mxu1 }
 0x38f   : > { %v1030_v12 = vmul.f32 %v1028_v56, %v1017_v11 }
 0x390   : > { %v1019_v4 = vpop.f32.mrf.mxu1 }
 0x391   : > { %v1038_v44 = vadd.f32 %v1036_v13, %v1030_v12  ;;  %v1031_v52 = vmul.f32 %v1028_v56, %v1019_v4 }
 0x392   : > { %v1021_v14 = vpop.f32.mrf.mxu1 }
 0x393   : > { %v2079_v53 = vmax.f32 %v1038_v44, 0.0  ;;  %v1039_v37 = vadd.f32 %v1036_v13, %v1031_v52 }
 0x394   : > { %v1022_v9 = vpop.f32.mrf.mxu1 }
 0x395   : > { %v2081_v28 = vmax.f32 %v1039_v37, 0.0  ;;  %1098 = vrot.lane.b32.xlu0 %v2079_v53, %s1420_s20 }
 0x397   : > { %1100 = vrot.lane.b32.xlu1 %v2081_v28, %s1420_s20 }
 0x399   : > { %1082 = vrot.lane.b32.xlu0 %v2079_v53, %s1414_s28 }
 0x39b   : > { %1084 = vrot.lane.b32.xlu1 %v2081_v28, %s1414_s28  ;;  %s2220_s28 = smov 15  }
 0x39d   : > { %1090 = vrot.lane.b32.xlu0 %v2079_v53, %s2218_s23 }
 0x39f   : > { %1092 = vrot.lane.b32.xlu1 %v2081_v28, %s2218_s23 }
 0x3a1   : > { %1074 = vrot.lane.b32.xlu0 %v2079_v53, %s2219_s18 }
 0x3a3   : > { %1076 = vrot.lane.b32.xlu1 %v2081_v28, %s2219_s18 }
 0x3a4   : > { %v1261_v2 = vpop.f32.mrf.mxu1 }
 0x3a5   : > { %v1280_v3 = vadd.f32 %v1261_v2, %v1815_v27  ;;  %1058 = vrot.lane.b32.xlu0 %v2079_v53, %s2220_s28 }
 0x3a6   : > { %v1263_v47 = vpop.f32.mrf.mxu1 }
 0x3a7   : > { %1288 = vst [vmem:[%s2103_s21] sm:$0xff] %v1280_v3  ;;  %v1281_v48 = vadd.f32 %v1263_v47, %v1818_v30  ;;  %1060 = vrot.lane.b32.xlu1 %v2081_v28, %s2220_s28 }
 0x3a8   : > { %v1265_v51 = vpop.f32.mrf.mxu1 }
 0x3a9   : > { %1289 = vst [vmem:[%s2103_s21 + $0x8] sm:$0xff] %v1281_v48  ;;  %v1282_v8 = vadd.f32 %v1265_v51, %v1821_v34  ;;  %1066 = vrot.lane.b32.xlu0 %v2079_v53, %s2221_s30 }
 0x3aa   : > { %v1267_v27 = vpop.f32.mrf.mxu1 }
 0x3ab   : > { %1290 = vst [vmem:[%s2103_s21 + $0x10] sm:$0xff] %v1282_v8  ;;  %v1283_v38 = vadd.f32 %v1267_v27, %v1826_v43  ;;  %1068 = vrot.lane.b32.xlu1 %v2081_v28, %s2221_s30 }
 0x3ac   : > { %v1271_v40 = vpop.f32.mrf.mxu1 }
 0x3ad   : > { %1291 = vst [vmem:[%s2103_s21 + $0x18] sm:$0xff] %v1283_v38  ;;  %v1284_v30 = vadd.f32 %v1271_v40, %v1017_v11  ;;  %1042 = vrot.lane.b32.xlu0 %v2079_v53, %s2217_s26 }
 0x3ae   : > { %v1273_v36 = vpop.f32.mrf.mxu1 }
 0x3af   : > { %1292 = vst [vmem:[%s2103_s21 + $0x20] sm:$0xff] %v1284_v30  ;;  %v1285_v33 = vadd.f32 %v1273_v36, %v1019_v4  ;;  %1044 = vrot.lane.b32.xlu1 %v2081_v28, %s2217_s26 }
 0x3b0   : > { %v1275_v35 = vpop.f32.mrf.mxu1 }
 0x3b1   : > { %1293 = vst [vmem:[%s2103_s21 + $0x28] sm:$0xff] %v1285_v33  ;;  %1050 = vrot.lane.b32.xlu0 %v2079_v53, %s2216_s25 }
 0x3b3   : > { %1052 = vrot.lane.b32.xlu1 %v2081_v28, %s2216_s25 }
 0x407   : > { %v1099_v34 = vpop.permute.xlu0 %1098 }
 0x409   : > { %v1101_v43 = vpop.permute.xlu1 %1100 }
 0x40a   : > { %v1102_v54 = vsel %vm698_vm8, %v1099_v34, %v1101_v43  ;;  %v1103_v56 = vsel %vm698_vm8, %v1101_v43, %v1099_v34  ;;  %v1116_v34 = vld [vmem:[%s2199_s10] sm:$0xf] }
 0x40b   : > { %v1104_v24 = vmul.f32 %v1792_v63, %v1102_v54  ;;  %v1105_v13 = vmul.f32 %v1797_v16, %v1103_v56  ;;  %v1083_v57 = vpop.permute.xlu0 %1082  ;;  %v1277_v54 = vpop.f32.mrf.mxu1 }
 0x40d   : > { %v1114_v1 = vpack.c.bf16 %v1104_v24, %v1104_v24  ;;  %v1115_v22 = vpack.c.bf16 %v1105_v13, %v1105_v13  ;;  %v1085_v25 = vpop.permute.xlu1 %1084 }
 0x40e   : > { %v1086_v7 = vsel %vm648_vm2, %v1083_v57, %v1085_v25  ;;  %v1087_v10 = vsel %vm648_vm2, %v1085_v25, %v1083_v57 }
 0x40f   : > { %v1091_v60 = vpop.permute.xlu0 %1090  ;;  %1368 = vmatprep.subr.msk.bf16.mxu0 %vm1121_vm9, %v1115_v22  ;;  %v1123_v23 = vsel %vm1121_vm9, %v1114_v1, 0  ;;  %v1088_v0 = vmul.f32 %v1086_v7, %v1665_v58  ;;  %v1089_v21 = vmul.f32 %v1087_v10, %v1668_v59 }
 0x410   : > { %1135 = vmatpush1.bf16.msra.mxu0 %v1123_v23 }
 0x411   : > { %v1093_v55 = vpop.permute.xlu1 %1092 }
 0x412   : > { %v1094_v63 = vsel %vm673_vm1, %v1091_v60, %v1093_v55  ;;  %v1095_v16 = vsel %vm673_vm1, %v1093_v55, %v1091_v60 }
 0x413   : > { %v1096_v29 = vmul.f32 %v1094_v63, %v1645_v41  ;;  %v1097_v15 = vmul.f32 %v1095_v16, %v1648_v42  ;;  %v1075_v31 = vpop.permute.xlu0 %1074 }
 0x415   : > { %v1112_v39 = vpack.c.bf16 %v1096_v29, %v1088_v0  ;;  %v1077_v26 = vpop.permute.xlu1 %1076  ;;  %v1113_v32 = vpack.c.bf16 %v1097_v15, %v1089_v21 }
 0x416   : > { %v1078_v5 = vsel %vm623_vm3, %v1075_v31, %v1077_v26  ;;  %v1079_v6 = vsel %vm623_vm3, %v1077_v26, %v1075_v31 }
 0x417   : > { %v1080_v11 = vmul.f32 %v1078_v5, %v1685_v17  ;;  %v1081_v58 = vmul.f32 %v1079_v6, %v1688_v18  ;;  %v1059_v12 = vpop.permute.xlu0 %1058  ;;  %1136 = vmatprep.subr.bf16.mxu0 %v1113_v32 }
 0x418   : > { %1137 = vmatpush1.bf16.msra.mxu0 %v1112_v39 }
 0x419   : > { %v1110_v41 = vpack.c.bf16 %v1080_v11, %v2079_v53  ;;  %v1061_v42 = vpop.permute.xlu1 %1060  ;;  %v1111_v59 = vpack.c.bf16 %v1081_v58, %v2081_v28 }
 0x41a   : > { %v1062_v44 = vsel %vm573_vm5, %v1059_v12, %v1061_v42  ;;  %v1063_v52 = vsel %vm573_vm5, %v1061_v42, %v1059_v12 }
 0x41b   : > { %v1067_v4 = vpop.permute.xlu0 %1066  ;;  %1138 = vmatprep.subr.bf16.mxu0 %v1111_v59  ;;  %v1064_v53 = vmul.f32 %v1063_v52, %v1731_v61  ;;  %v1065_v37 = vmul.f32 %v1062_v44, %v1734_v62 }
 0x41c   : > { %1139 = vmatpush1.bf16.msra.mxu0 %v1110_v41 }
 0x41d   : > { %v1069_v17 = vpop.permute.xlu1 %1068 }
 0x41e   : > { %v1070_v18 = vsel %vm598_vm4, %v1067_v4, %v1069_v17  ;;  %v1071_v14 = vsel %vm598_vm4, %v1069_v17, %v1067_v4 }
 0x41f   : > { %v1072_v9 = vmul.f32 %v1071_v14, %v1705_v45  ;;  %v1073_v28 = vmul.f32 %v1070_v18, %v1708_v46  ;;  %v1043_v2 = vpop.permute.xlu0 %1042 }
 0x421   : > { %v1108_v3 = vpack.c.bf16 %v1072_v9, %v1064_v53  ;;  %v1045_v47 = vpop.permute.xlu1 %1044  ;;  %v1109_v48 = vpack.c.bf16 %v1073_v28, %v1065_v37 }
 0x422   : > { %v1046_v51 = vsel %vm523_vm7, %v1043_v2, %v1045_v47  ;;  %v1047_v8 = vsel %vm523_vm7, %v1045_v47, %v1043_v2 }
 0x423   : > { %1140 = vmatprep.subr.bf16.mxu0 %v1109_v48  ;;  %v1051_v27 = vpop.permute.xlu0 %1050  ;;  %v1048_v46 = vmul.f32 %v1047_v8, %v1771_v49  ;;  %v1049_v38 = vmul.f32 %v1046_v51, %v1774_v50 }
 0x424   : > { %1141 = vmatpush1.bf16.msra.mxu0 %v1108_v3 }
 0x425   : > { %v1053_v61 = vpop.permute.xlu1 %1052 }
 0x426   : > { %v1054_v62 = vsel %vm548_vm6, %v1051_v27, %v1053_v61  ;;  %v1055_v45 = vsel %vm548_vm6, %v1053_v61, %v1051_v27 }
 0x427   : > { %v1056_v40 = vmul.f32 %v1055_v45, %v1751_v19  ;;  %v1057_v30 = vmul.f32 %v1054_v62, %v1754_v20 }
 0x429   : > { %v1106_v36 = vpack.c.bf16 %v1056_v40, %v1048_v46  ;;  %v1107_v33 = vpack.c.bf16 %v1057_v30, %v1049_v38 }
 0x42b   : > { %1142 = vmatprep.subr.bf16.mxu0 %v1107_v33 }
 0x42c   : > { %1143 = vmatpush1.bf16.msra.mxu0 %v1106_v36 }
 0x42f   : > { %1369 = vmatmul.mubr.msk.bf16.vlgmr.msra.gmra.mxu0 %vm1117_vm10, %v1116_v34 }
 0x4ef   : > { %v1162_v49 = vpop.f32.mrf.mxu0 }
 0x4f0   : > { %v1286_v43 = vadd.f32 %v1275_v35, %v1162_v49 }
 0x4f1   : > { %v1164_v50 = vpop.f32.mrf.mxu0 }
 0x4f2   : > { %1294 = vst [vmem:[%s2103_s21 + $0x30] sm:$0xff] %v1286_v43  ;;  %v1287_v19 = vadd.f32 %v1277_v54, %v1164_v50 }
 0x4f3   : > { %v1166_v56 = vpop.f32.mrf.mxu0 }
 0x4f4   : > { %1295 = vst [vmem:[%s2103_s21 + $0x38] sm:$0xff] %v1287_v19 }
 0x4f5   : > { %v1167_v20 = vpop.f32.mrf.mxu0 }
 0x4f6 PF: > { %s24_s29 = sadd.s32 1, %s1410_s29  }
 0x4f7   : > { %p21_p4 = scmp.ge.s32.totalorder %s24_s29, 4  }
 0x4f9   :  { %23 = sbr.rel (!%p21_p4) target bundleno = 1 (0x1), region = 106 }

</bundles_post_ra>
